<compile_context>
chip_gen: v6e
topology: v6e:2x2x1
jax: 0.10.0
libtpu: 0.0.40
codegen_flags: <defaults>
</compile_context>

<pallas_src>
import jax
import jax.numpy as jnp
from jax.experimental import pallas as pl
from jax.experimental.pallas import tpu as pltpu

_BN_EPS = 0.1  # MetaBatchNormLayer default eps


# ------------------------------ fused kernel --------------------------------
def _fused_decoder_kernel(x_ref,
                          w1_ref, b1_ref, g1_ref, be1_ref,
                          w2_ref, b2_ref, g2_ref, be2_ref,
                          w3_ref, b3_ref, g3_ref, be3_ref,
                          w4_ref, b4_ref,
                          o_ref):
    def linear_relu_bn(h, w_ref, b_ref, g_ref, be_ref):
        # Linear (MXU, f32 accumulation) + bias
        z = jnp.dot(h, w_ref[...], preferred_element_type=jnp.float32)
        z = z + b_ref[...]
        # ReLU
        z = jnp.maximum(z, 0.0)
        # Training-mode BatchNorm1d: batch statistics (biased variance).
        mean = jnp.mean(z, axis=0, keepdims=True)          # (1, C)
        cen = z - mean
        var = jnp.mean(cen * cen, axis=0, keepdims=True)    # (1, C), biased
        zhat = cen * jax.lax.rsqrt(var + _BN_EPS)
        # Per-step affine (weight[step], bias[step]), selected on host.
        return zhat * g_ref[...] + be_ref[...]

    h = x_ref[...]                                           # (B, in_dim)
    h = linear_relu_bn(h, w1_ref, b1_ref, g1_ref, be1_ref)   # (B, hidden)
    h = linear_relu_bn(h, w2_ref, b2_ref, g2_ref, be2_ref)   # (B, hidden)
    h = linear_relu_bn(h, w3_ref, b3_ref, g3_ref, be3_ref)   # (B, out_dim)
    o_ref[...] = (jnp.dot(h, w4_ref[...],
                          preferred_element_type=jnp.float32)
                  + b4_ref[...])                             # (B, binary)


# ------------------------------ host wrapper ---------------------------------
def mamlpp_mlp_decoder_forward(x, params, step=0):
    """x: (B, in_dim) float32.  Returns (B, binary) float32."""
    p = params
    # Select the per-step BN affine params on the host (step is a static int).
    args = [
        x,
        p["w1"], p["b1"], p["bn1_w"][step][None, :], p["bn1_b"][step][None, :],
        p["w2"], p["b2"], p["bn2_w"][step][None, :], p["bn2_b"][step][None, :],
        p["w3"], p["b3"], p["bn3_w"][step][None, :], p["bn3_b"][step][None, :],
        p["w4"], p["b4"],
    ]
    B = x.shape[0]
    binary = p["w4"].shape[1]
    vmem_spec = pl.BlockSpec(memory_space=pltpu.MemorySpace.VMEM)
    return pl.pallas_call(
        _fused_decoder_kernel,
        out_shape=jax.ShapeDtypeStruct((B, binary), jnp.float32),
        in_specs=[vmem_spec] * len(args),
        out_specs=vmem_spec,
    )(*args)


# -------------------------- pure-JAX reference -------------------------------
def _reference_forward(x, params, step=0):
    p = params

    def layer(h, w, b, g, be):
        z = jnp.maximum(h @ w + b, 0.0)
        mean = jnp.mean(z, axis=0, keepdims=True)
        var = jnp.mean((z - mean) ** 2, axis=0, keepdims=True)
        return (z - mean) / jnp.sqrt(var + _BN_EPS) * g[step] + be[step]

    h = layer(x, p["w1"], p["b1"], p["bn1_w"], p["bn1_b"])
    h = layer(h, p["w2"], p["b2"], p["bn2_w"], p["bn2_b"])
    h = layer(h, p["w3"], p["b3"], p["bn3_w"], p["bn3_b"])
    return h @ p["w4"] + p["b4"]


# --------------------------- parameter construction --------------------------
def init_params(key, in_dim, hidden_dim, out_dim, binary=1, step=3):
    def linear(k, din, dout):
        kw, kb = jax.random.split(k)
        bound = 1.0 / float(din) ** 0.5
        # Weights stored (in, out) so the kernel does x @ W directly.
        w = jax.random.uniform(kw, (din, dout), jnp.float32, -bound, bound)
        b = jax.random.uniform(kb, (1, dout), jnp.float32, -bound, bound)
        return w, b

    ks = jax.random.split(key, 7)
    p = {}
    p["w1"], p["b1"] = linear(ks[0], in_dim, hidden_dim)
    p["w2"], p["b2"] = linear(ks[1], hidden_dim, hidden_dim)
    p["w3"], p["b3"] = linear(ks[2], hidden_dim, out_dim)
    p["w4"], p["b4"] = linear(ks[3], out_dim, binary)
    # MetaBatchNormLayer per-step affine params (init weight=1, bias=0 in the
    # reference code); perturb slightly so the scale/shift path is exercised.
    k4, k5, k6 = ks[4], ks[5], ks[6]
    p["bn1_w"] = 1.0 + 0.1 * jax.random.normal(k4, (step, hidden_dim), jnp.float32)
    p["bn1_b"] = 0.1 * jax.random.normal(jax.random.fold_in(k4, 1),
                                         (step, hidden_dim), jnp.float32)
    p["bn2_w"] = 1.0 + 0.1 * jax.random.normal(k5, (step, hidden_dim), jnp.float32)
    p["bn2_b"] = 0.1 * jax.random.normal(jax.random.fold_in(k5, 1),
                                         (step, hidden_dim), jnp.float32)
    p["bn3_w"] = 1.0 + 0.1 * jax.random.normal(k6, (step, out_dim), jnp.float32)
    p["bn3_b"] = 0.1 * jax.random.normal(jax.random.fold_in(k6, 1),
                                         (step, out_dim), jnp.float32)
    return p


# ---------------------------------- main -------------------------------------
if __name__ == "__main__":
    B = 8
    in_dim, hidden_dim, out_dim, binary, n_steps = 64, 32, 16, 1, 3

    key = jax.random.PRNGKey(0)
    kp, kx = jax.random.split(key)
    params = init_params(kp, in_dim, hidden_dim, out_dim, binary, n_steps)
    x = jax.random.normal(kx, (B, in_dim), jnp.float32)

    fwd = jax.jit(mamlpp_mlp_decoder_forward, static_argnames=("step",))
    out = fwd(x, params, step=0)
    out = jax.block_until_ready(out)

    assert out.shape == (B, binary), out.shape
    assert bool(jnp.all(jnp.isfinite(out)))

    ref = _reference_forward(x, params, step=0)
    assert bool(jnp.allclose(out, ref, atol=1e-3, rtol=1e-3)), (
        float(jnp.max(jnp.abs(out - ref))))

    print("KERNEL_OK")
</pallas_src>

<mosaic_0001>
module attributes {stable_mosaic.version = 11 : i64} {
  func.func @_fused_decoder_kernel(%arg0: memref<8x64xf32, #tpu.memory_space<vmem>>, %arg1: memref<64x32xf32, #tpu.memory_space<vmem>>, %arg2: memref<1x32xf32, #tpu.memory_space<vmem>>, %arg3: memref<1x32xf32, #tpu.memory_space<vmem>>, %arg4: memref<1x32xf32, #tpu.memory_space<vmem>>, %arg5: memref<32x32xf32, #tpu.memory_space<vmem>>, %arg6: memref<1x32xf32, #tpu.memory_space<vmem>>, %arg7: memref<1x32xf32, #tpu.memory_space<vmem>>, %arg8: memref<1x32xf32, #tpu.memory_space<vmem>>, %arg9: memref<32x16xf32, #tpu.memory_space<vmem>>, %arg10: memref<1x16xf32, #tpu.memory_space<vmem>>, %arg11: memref<1x16xf32, #tpu.memory_space<vmem>>, %arg12: memref<1x16xf32, #tpu.memory_space<vmem>>, %arg13: memref<16x1xf32, #tpu.memory_space<vmem>>, %arg14: memref<1x1xf32, #tpu.memory_space<vmem>>, %arg15: memref<8x1xf32, #tpu.memory_space<vmem>>) attributes {dimension_semantics = [], scalar_prefetch = 0 : i64, scratch_operands = 0 : i64, tpu.core_type = #tpu.core_type<tc>} {
    %c0 = arith.constant 0 : index
    %c0_0 = arith.constant 0 : index
    %0 = vector.load %arg0[%c0, %c0_0] : memref<8x64xf32, #tpu.memory_space<vmem>>, vector<8x64xf32>
    %c0_1 = arith.constant 0 : index
    %c0_2 = arith.constant 0 : index
    %1 = vector.load %arg1[%c0_1, %c0_2] : memref<64x32xf32, #tpu.memory_space<vmem>>, vector<64x32xf32>
    %cst = arith.constant dense<0.000000e+00> : vector<8x32xf32>
    %2 = tpu.matmul %0, %1, %cst {dimension_numbers = #tpu.dot_dimension_numbers<[1], [0], [0], [1], [0, 0, 1, 1], [], []>} : vector<8x64xf32>, vector<64x32xf32>, vector<8x32xf32> -> vector<8x32xf32>
    %c0_3 = arith.constant 0 : index
    %c0_4 = arith.constant 0 : index
    %3 = vector.load %arg2[%c0_3, %c0_4] : memref<1x32xf32, #tpu.memory_space<vmem>>, vector<1x32xf32>
    %4 = vector.broadcast %3 : vector<1x32xf32> to vector<8x32xf32>
    %5 = arith.addf %2, %4 : vector<8x32xf32>
    %cst_5 = arith.constant 0.000000e+00 : f32
    %6 = vector.broadcast %cst_5 : f32 to vector<8x32xf32>
    %7 = arith.maximumf %5, %6 : vector<8x32xf32>
    %cst_6 = arith.constant dense<0.000000e+00> : vector<32xf32>
    %8 = vector.multi_reduction <add>, %7, %cst_6 [0] : vector<8x32xf32> to vector<32xf32>
    %9 = vector.shape_cast %8 : vector<32xf32> to vector<1x32xf32>
    %cst_7 = arith.constant 8.000000e+00 : f32
    %10 = vector.broadcast %cst_7 : f32 to vector<1x32xf32>
    %11 = arith.divf %9, %10 : vector<1x32xf32>
    %12 = vector.broadcast %11 : vector<1x32xf32> to vector<8x32xf32>
    %13 = arith.subf %7, %12 : vector<8x32xf32>
    %14 = arith.mulf %13, %13 : vector<8x32xf32>
    %cst_8 = arith.constant dense<0.000000e+00> : vector<32xf32>
    %15 = vector.multi_reduction <add>, %14, %cst_8 [0] : vector<8x32xf32> to vector<32xf32>
    %16 = vector.shape_cast %15 : vector<32xf32> to vector<1x32xf32>
    %cst_9 = arith.constant 8.000000e+00 : f32
    %17 = vector.broadcast %cst_9 : f32 to vector<1x32xf32>
    %18 = arith.divf %16, %17 : vector<1x32xf32>
    %cst_10 = arith.constant 1.000000e-01 : f32
    %19 = vector.broadcast %cst_10 : f32 to vector<1x32xf32>
    %20 = arith.addf %18, %19 : vector<1x32xf32>
    %21 = math.rsqrt %20 : vector<1x32xf32>
    %22 = vector.broadcast %21 : vector<1x32xf32> to vector<8x32xf32>
    %23 = arith.mulf %13, %22 : vector<8x32xf32>
    %c0_11 = arith.constant 0 : index
    %c0_12 = arith.constant 0 : index
    %24 = vector.load %arg3[%c0_11, %c0_12] : memref<1x32xf32, #tpu.memory_space<vmem>>, vector<1x32xf32>
    %25 = vector.broadcast %24 : vector<1x32xf32> to vector<8x32xf32>
    %26 = arith.mulf %23, %25 : vector<8x32xf32>
    %c0_13 = arith.constant 0 : index
    %c0_14 = arith.constant 0 : index
    %27 = vector.load %arg4[%c0_13, %c0_14] : memref<1x32xf32, #tpu.memory_space<vmem>>, vector<1x32xf32>
    %28 = vector.broadcast %27 : vector<1x32xf32> to vector<8x32xf32>
    %29 = arith.addf %26, %28 : vector<8x32xf32>
    %c0_15 = arith.constant 0 : index
    %c0_16 = arith.constant 0 : index
    %30 = vector.load %arg5[%c0_15, %c0_16] : memref<32x32xf32, #tpu.memory_space<vmem>>, vector<32x32xf32>
    %cst_17 = arith.constant dense<0.000000e+00> : vector<8x32xf32>
    %31 = tpu.matmul %29, %30, %cst_17 {dimension_numbers = #tpu.dot_dimension_numbers<[1], [0], [0], [1], [0, 0, 1, 1], [], []>} : vector<8x32xf32>, vector<32x32xf32>, vector<8x32xf32> -> vector<8x32xf32>
    %c0_18 = arith.constant 0 : index
    %c0_19 = arith.constant 0 : index
    %32 = vector.load %arg6[%c0_18, %c0_19] : memref<1x32xf32, #tpu.memory_space<vmem>>, vector<1x32xf32>
    %33 = vector.broadcast %32 : vector<1x32xf32> to vector<8x32xf32>
    %34 = arith.addf %31, %33 : vector<8x32xf32>
    %cst_20 = arith.constant 0.000000e+00 : f32
    %35 = vector.broadcast %cst_20 : f32 to vector<8x32xf32>
    %36 = arith.maximumf %34, %35 : vector<8x32xf32>
    %cst_21 = arith.constant dense<0.000000e+00> : vector<32xf32>
    %37 = vector.multi_reduction <add>, %36, %cst_21 [0] : vector<8x32xf32> to vector<32xf32>
    %38 = vector.shape_cast %37 : vector<32xf32> to vector<1x32xf32>
    %cst_22 = arith.constant 8.000000e+00 : f32
    %39 = vector.broadcast %cst_22 : f32 to vector<1x32xf32>
    %40 = arith.divf %38, %39 : vector<1x32xf32>
    %41 = vector.broadcast %40 : vector<1x32xf32> to vector<8x32xf32>
    %42 = arith.subf %36, %41 : vector<8x32xf32>
    %43 = arith.mulf %42, %42 : vector<8x32xf32>
    %cst_23 = arith.constant dense<0.000000e+00> : vector<32xf32>
    %44 = vector.multi_reduction <add>, %43, %cst_23 [0] : vector<8x32xf32> to vector<32xf32>
    %45 = vector.shape_cast %44 : vector<32xf32> to vector<1x32xf32>
    %cst_24 = arith.constant 8.000000e+00 : f32
    %46 = vector.broadcast %cst_24 : f32 to vector<1x32xf32>
    %47 = arith.divf %45, %46 : vector<1x32xf32>
    %cst_25 = arith.constant 1.000000e-01 : f32
    %48 = vector.broadcast %cst_25 : f32 to vector<1x32xf32>
    %49 = arith.addf %47, %48 : vector<1x32xf32>
    %50 = math.rsqrt %49 : vector<1x32xf32>
    %51 = vector.broadcast %50 : vector<1x32xf32> to vector<8x32xf32>
    %52 = arith.mulf %42, %51 : vector<8x32xf32>
    %c0_26 = arith.constant 0 : index
    %c0_27 = arith.constant 0 : index
    %53 = vector.load %arg7[%c0_26, %c0_27] : memref<1x32xf32, #tpu.memory_space<vmem>>, vector<1x32xf32>
    %54 = vector.broadcast %53 : vector<1x32xf32> to vector<8x32xf32>
    %55 = arith.mulf %52, %54 : vector<8x32xf32>
    %c0_28 = arith.constant 0 : index
    %c0_29 = arith.constant 0 : index
    %56 = vector.load %arg8[%c0_28, %c0_29] : memref<1x32xf32, #tpu.memory_space<vmem>>, vector<1x32xf32>
    %57 = vector.broadcast %56 : vector<1x32xf32> to vector<8x32xf32>
    %58 = arith.addf %55, %57 : vector<8x32xf32>
    %c0_30 = arith.constant 0 : index
    %c0_31 = arith.constant 0 : index
    %59 = vector.load %arg9[%c0_30, %c0_31] : memref<32x16xf32, #tpu.memory_space<vmem>>, vector<32x16xf32>
    %cst_32 = arith.constant dense<0.000000e+00> : vector<8x16xf32>
    %60 = tpu.matmul %58, %59, %cst_32 {dimension_numbers = #tpu.dot_dimension_numbers<[1], [0], [0], [1], [0, 0, 1, 1], [], []>} : vector<8x32xf32>, vector<32x16xf32>, vector<8x16xf32> -> vector<8x16xf32>
    %c0_33 = arith.constant 0 : index
    %c0_34 = arith.constant 0 : index
    %61 = vector.load %arg10[%c0_33, %c0_34] : memref<1x16xf32, #tpu.memory_space<vmem>>, vector<1x16xf32>
    %62 = vector.broadcast %61 : vector<1x16xf32> to vector<8x16xf32>
    %63 = arith.addf %60, %62 : vector<8x16xf32>
    %cst_35 = arith.constant 0.000000e+00 : f32
    %64 = vector.broadcast %cst_35 : f32 to vector<8x16xf32>
    %65 = arith.maximumf %63, %64 : vector<8x16xf32>
    %cst_36 = arith.constant dense<0.000000e+00> : vector<16xf32>
    %66 = vector.multi_reduction <add>, %65, %cst_36 [0] : vector<8x16xf32> to vector<16xf32>
    %67 = vector.shape_cast %66 : vector<16xf32> to vector<1x16xf32>
    %cst_37 = arith.constant 8.000000e+00 : f32
    %68 = vector.broadcast %cst_37 : f32 to vector<1x16xf32>
    %69 = arith.divf %67, %68 : vector<1x16xf32>
    %70 = vector.broadcast %69 : vector<1x16xf32> to vector<8x16xf32>
    %71 = arith.subf %65, %70 : vector<8x16xf32>
    %72 = arith.mulf %71, %71 : vector<8x16xf32>
    %cst_38 = arith.constant dense<0.000000e+00> : vector<16xf32>
    %73 = vector.multi_reduction <add>, %72, %cst_38 [0] : vector<8x16xf32> to vector<16xf32>
    %74 = vector.shape_cast %73 : vector<16xf32> to vector<1x16xf32>
    %cst_39 = arith.constant 8.000000e+00 : f32
    %75 = vector.broadcast %cst_39 : f32 to vector<1x16xf32>
    %76 = arith.divf %74, %75 : vector<1x16xf32>
    %cst_40 = arith.constant 1.000000e-01 : f32
    %77 = vector.broadcast %cst_40 : f32 to vector<1x16xf32>
    %78 = arith.addf %76, %77 : vector<1x16xf32>
    %79 = math.rsqrt %78 : vector<1x16xf32>
    %80 = vector.broadcast %79 : vector<1x16xf32> to vector<8x16xf32>
    %81 = arith.mulf %71, %80 : vector<8x16xf32>
    %c0_41 = arith.constant 0 : index
    %c0_42 = arith.constant 0 : index
    %82 = vector.load %arg11[%c0_41, %c0_42] : memref<1x16xf32, #tpu.memory_space<vmem>>, vector<1x16xf32>
    %83 = vector.broadcast %82 : vector<1x16xf32> to vector<8x16xf32>
    %84 = arith.mulf %81, %83 : vector<8x16xf32>
    %c0_43 = arith.constant 0 : index
    %c0_44 = arith.constant 0 : index
    %85 = vector.load %arg12[%c0_43, %c0_44] : memref<1x16xf32, #tpu.memory_space<vmem>>, vector<1x16xf32>
    %86 = vector.broadcast %85 : vector<1x16xf32> to vector<8x16xf32>
    %87 = arith.addf %84, %86 : vector<8x16xf32>
    %c0_45 = arith.constant 0 : index
    %c0_46 = arith.constant 0 : index
    %88 = vector.load %arg13[%c0_45, %c0_46] : memref<16x1xf32, #tpu.memory_space<vmem>>, vector<16x1xf32>
    %cst_47 = arith.constant dense<0.000000e+00> : vector<8x1xf32>
    %89 = tpu.matmul %87, %88, %cst_47 {dimension_numbers = #tpu.dot_dimension_numbers<[1], [0], [0], [1], [0, 0, 1, 1], [], []>} : vector<8x16xf32>, vector<16x1xf32>, vector<8x1xf32> -> vector<8x1xf32>
    %c0_48 = arith.constant 0 : index
    %c0_49 = arith.constant 0 : index
    %90 = vector.load %arg14[%c0_48, %c0_49] : memref<1x1xf32, #tpu.memory_space<vmem>>, vector<1x1xf32>
    %91 = vector.broadcast %90 : vector<1x1xf32> to vector<8x1xf32>
    %92 = arith.addf %89, %91 : vector<8x1xf32>
    %c0_50 = arith.constant 0 : index
    %c0_51 = arith.constant 0 : index
    %93 = vector.load %arg15[%c0_50, %c0_51] : memref<8x1xf32, #tpu.memory_space<vmem>>, vector<8x1xf32>
    tpu.vector_store %arg15[%c0_50, %c0_51], %92 {strides = array<i32>} : memref<8x1xf32, #tpu.memory_space<vmem>>, vector<8x1xf32>,
    return
  }
}

</mosaic_0001>

<bundles_post_ra>
// kernel: mamlpp_mlp_decoder_forward.1
= control target key start
LH: loop header
LB: loop body
LE: loop exit
PB: predicated region body
PF: predicated region fallthrough
CT: control target
= control target key end

     0   :  { %v607_v0 = vmov 0.0   ;;  %vm608_vm0 = vmmov 0   ;;  %vm68_vm1 = vcmask 523264   ;;  %vm143_vm2 = vcmask 261120   ;;  %s814_s1 = inlined_call_operand.vmem [shape: f32[64,32], index: 1, kind: input, shape index: {}]   ;;  %s815_s0 = inlined_call_operand.vmem [shape: f32[8,64], index: 0, kind: input, shape index: {}]   ;;  %s816_s5 = inlined_call_operand.vmem [shape: f32[32,32], index: 5, kind: input, shape index: {}]   ;;  %s817_s2 = inlined_call_operand.vmem [shape: f32[1,32], index: 2, kind: input, shape index: {}]   ;;  %s818_s3 = inlined_call_operand.vmem [shape: f32[1,32], index: 3, kind: input, shape index: {}]   ;;  %s819_s4 = inlined_call_operand.vmem [shape: f32[1,32], index: 4, kind: input, shape index: {}]   ;;  %s820_s9 = inlined_call_operand.vmem [shape: f32[32,16], index: 9, kind: input, shape index: {}]   ;;  %s821_s6 = inlined_call_operand.vmem [shape: f32[1,32], index: 6, kind: input, shape index: {}]   ;;  %s822_s7 = inlined_call_operand.vmem [shape: f32[1,32], index: 7, kind: input, shape index: {}]   ;;  %s823_s8 = inlined_call_operand.vmem [shape: f32[1,32], index: 8, kind: input, shape index: {}]   ;;  %s824_s13 = inlined_call_operand.vmem [shape: f32[16,1], index: 13, kind: input, shape index: {}]   ;;  %s825_s14 = inlined_call_operand.<no memory space> [shape: f32[1,1], index: 14, kind: input, shape index: {}]   ;;  %s826_s10 = inlined_call_operand.vmem [shape: f32[1,16], index: 10, kind: input, shape index: {}]   ;;  %s827_s11 = inlined_call_operand.vmem [shape: f32[1,16], index: 11, kind: input, shape index: {}]   ;;  %s828_s12 = inlined_call_operand.vmem [shape: f32[1,16], index: 12, kind: input, shape index: {}]   ;;  %s829_s15 = inlined_call_operand.vmem [shape: f32[8,1], index: 15, kind: output, shape index: {}]  }
   0x1   :  { %551 = vmatprep.subr.mxu0 %v607_v0  ;;  %v60_v1 = vld [vmem:[%s814_s1 + $0x38] sm:$0xff]  ;;  %v59_v2 = vld [vmem:[%s814_s1 + $0x30] sm:$0xff]  ;;  %567 = vmatprep.mubr.msk.f32.mxu0 %vm608_vm0, %v607_v0  ;;  %v58_v3 = vld [vmem:[%s814_s1 + $0x28] sm:$0xff]  ;;  %vm389_vm3 = vcmask 130048   ;;  %vm509_vm4 = vcmask 7168  }
   0x2   :  { %552 = vmatpush3.msra.mxu0 %v60_v1  ;;  %570 = vmatprep.subr.mxu1 %v607_v0  ;;  %v57_v4 = vld [vmem:[%s814_s1 + $0x20] sm:$0xff]  ;;  %v56_v5 = vld [vmem:[%s814_s1 + $0x18] sm:$0xff]  ;;  %v55_v6 = vld [vmem:[%s814_s1 + $0x10] sm:$0xff] }
   0x3   :  { %553 = vmatprep.subr.mxu0 %v607_v0  ;;  %578 = vmatprep.mubr.msk.f32.mxu1 %vm608_vm0, %v607_v0  ;;  %v54_v7 = vld [vmem:[%s814_s1 + $0x8] sm:$0xff]  ;;  %v53_v8 = vld [vmem:[%s814_s1] sm:$0xff]  ;;  %v185_v10 = vld [vmem:[%s816_s5 + $0x18] sm:$0xff] }
   0x4   :  { %554 = vmatpush3.msra.mxu0 %v59_v2  ;;  %v52_v9 = vld [vmem:[%s815_s0] sm:$0xff]  ;;  %571 = vmatpush3.msra.mxu1 %v185_v10  ;;  %v184_v11 = vld [vmem:[%s816_s5 + $0x10] sm:$0xff]  ;;  %v183_v12 = vld [vmem:[%s816_s5 + $0x8] sm:$0xff] }
   0x5   :  { %555 = vmatprep.subr.mxu0 %v607_v0  ;;  %572 = vmatprep.subr.mxu1 %v607_v0  ;;  %v182_v13 = vld [vmem:[%s816_s5] sm:$0xff]  ;;  %v307_v44 = vld [vmem:[%s820_s9 + $0x18] sm:$0xff]  ;;  %v306_v45 = vld [vmem:[%s820_s9 + $0x10] sm:$0xff] }
   0x6   :  { %556 = vmatpush3.msra.mxu0 %v58_v3  ;;  %573 = vmatpush3.msra.mxu1 %v184_v11  ;;  %v515_v14 = vld [vmem:[%s817_s2] ss:$0 sm:$0xff]  ;;  %v305_v46 = vld [vmem:[%s820_s9 + $0x8] sm:$0xff] }
   0x7   :  { %557 = vmatprep.subr.mxu0 %v607_v0  ;;  %574 = vmatprep.subr.mxu1 %v607_v0  ;;  %v517_v39 = vld [vmem:[%s818_s3] ss:$0 sm:$0xff] }
   0x8   :  { %558 = vmatpush3.msra.mxu0 %v57_v4  ;;  %575 = vmatpush3.msra.mxu1 %v183_v12  ;;  %v518_v41 = vld [vmem:[%s819_s4] ss:$0 sm:$0xff] }
   0x9   :  { %559 = vmatprep.subr.mxu0 %v607_v0  ;;  %576 = vmatprep.subr.mxu1 %v607_v0  ;;  %v304_v47 = vld [vmem:[%s820_s9] sm:$0xff] }
   0xa   :  { %560 = vmatpush3.msra.mxu0 %v56_v5  ;;  %577 = vmatpush3.msra.mxu1 %v182_v13  ;;  %v519_v48 = vld [vmem:[%s821_s6] ss:$0 sm:$0xff] }
   0xb   :  { %561 = vmatprep.subr.mxu0 %v607_v0  ;;  %581 = vmatprep.subr.mxu1 %v607_v0  ;;  %v521_v10 = vld [vmem:[%s822_s7] ss:$0 sm:$0xff] }
   0xc   :  { %562 = vmatpush3.msra.mxu0 %v55_v6  ;;  %v522_v12 = vld [vmem:[%s823_s8] ss:$0 sm:$0xff] }
   0xd   :  { %563 = vmatprep.subr.mxu0 %v607_v0 }
   0xe   :  { %564 = vmatpush3.msra.mxu0 %v54_v7 }
   0xf   :  { %565 = vmatprep.subr.mxu0 %v607_v0 }
  0x10   :  { %566 = vmatpush3.msra.mxu0 %v53_v8 }
  0x11   :  { %568 = vmatmul.mubr.msk.f32.vlgmr.msra.gmra.mxu0 %vm68_vm1, %v52_v9  ;;  %592 = vmatprep.subr.mxu0 %v607_v0 }
  0x12   :  { %596 = vmatprep.mubr.msk.f32.mxu0 %vm608_vm0, %v607_v0 }
  0xd1   :  { %v138_v15 = vpop.f32.mrf.mxu0 }
  0xd2   :  { %v139_v16 = vadd.f32 %v515_v14, %v138_v15  ;;  %v428_v15 = vld [vmem:[%s824_s13 + $0x8] sm:$0xff] }
  0xd3   :  { %v569_v17 = vpop.f32.mrf.mxu0  ;;  %593 = vmatpush3.msra.mxu0 %v428_v15 }
  0xd4   :  { %v142_v18 = vmax.f32 %v139_v16, 0.0  ;;  %594 = vmatprep.subr.mxu0 %v607_v0  ;;  %v427_v16 = vld [vmem:[%s824_s13] sm:$0xff]  ;;  %v20_v17 = vstv %s825_s14 }
  0xd5   :  { %595 = vmatpush3.msra.mxu0 %v427_v16  ;;  %21 = vst [vmem:[#allocation2] sm:$0x1] %v20_v17 }
  0xd6   :  { %v144_v19 = vsel %vm143_vm2, %v142_v18, 0.0 }
  0xd7   :  { %v145_v20 = vrot.slane %v144_v19, 4 }
  0xd9   :  { %v146_v21 = vadd.f32 %v145_v20, %v144_v19 }
  0xdb   :  { %v147_v22 = vrot.slane %v146_v21, 2 }
  0xdd   :  { %v148_v23 = vadd.f32 %v147_v22, %v146_v21 }
  0xdf   :  { %v149_v24 = vrot.slane %v148_v23, 1 }
  0xe1   :  { %v150_v25 = vadd.f32 %v149_v24, %v148_v23 }
  0xe3   :  { %v152_v26 = vmul.f32 0.125, %v150_v25 }
  0xe5   :  { %v153_v27 = vsub.f32 %v142_v18, %v152_v26  ;;  %v523_v18 = vld [vmem:[%s826_s10] ss:$0 sm:$0xff] }
  0xe7   :  { %v154_v28 = vmul.f32 %v153_v27, %v153_v27 }
  0xe9   :  { %v155_v29 = vsel %vm143_vm2, %v154_v28, 0.0 }
  0xea   :  { %v156_v30 = vrot.slane %v155_v29, 4 }
  0xec   :  { %v157_v31 = vadd.f32 %v156_v30, %v155_v29 }
  0xee   :  { %v158_v32 = vrot.slane %v157_v31, 2 }
  0xf0   :  { %v159_v33 = vadd.f32 %v158_v32, %v157_v31 }
  0xf2   :  { %v160_v34 = vrot.slane %v159_v33, 1 }
  0xf4   :  { %v161_v35 = vadd.f32 %v160_v34, %v159_v33 }
  0xf6   :  { %v162_v36 = vmul.f32 0.125, %v161_v35 }
  0xf8   :  { %v163_v37 = vadd.f32 0.1, %v162_v36 }
  0xfa   :  { %601 = vrsqrt.f32 %v163_v37 }
 0x107   :  { %v602_v38 = vpop.eup %601 }
 0x108   :  { %v165_v40 = vmul.f32 %v602_v38, %v153_v27 }
 0x10a   :  { %v173_v42 = vmul.f32 %v517_v39, %v165_v40 }
 0x10c   :  { %v181_v43 = vadd.f32 %v518_v41, %v173_v42  ;;  %v525_v42 = vld [vmem:[%s827_s11] ss:$0 sm:$0xff] }
 0x10e   :  { %579 = vmatmul.mubr.msk.f32.vlgmr.msra.gmra.mxu1 %vm143_vm2, %v181_v43 }
 0x10f   :  { %589 = vmatprep.mubr.msk.f32.mxu1 %vm608_vm0, %v607_v0  ;;  %582 = vmatpush3.msra.mxu1 %v307_v44  ;;  %v526_v44 = vld [vmem:[%s828_s12] ss:$0 sm:$0xff] }
 0x110   :  { %583 = vmatprep.subr.mxu1 %v607_v0 }
 0x111   :  { %584 = vmatpush3.msra.mxu1 %v306_v45 }
 0x112   :  { %585 = vmatprep.subr.mxu1 %v607_v0 }
 0x113   :  { %586 = vmatpush3.msra.mxu1 %v305_v46 }
 0x114   :  { %587 = vmatprep.subr.mxu1 %v607_v0 }
 0x115   :  { %588 = vmatpush3.msra.mxu1 %v304_v47  ;;  %v527_v47 = vld [vmem:[#allocation2] ss:$0 sm:$0xff] }
 0x1ce   :  { %v262_v49 = vpop.f32.mrf.mxu1 }
 0x1cf   :  { %v263_v50 = vadd.f32 %v519_v48, %v262_v49 }
 0x1d0   :  { %v580_v51 = vpop.f32.mrf.mxu1 }
 0x1d1   :  { %v266_v52 = vmax.f32 %v263_v50, 0.0 }
 0x1d3   :  { %v267_v53 = vsel %vm143_vm2, %v266_v52, 0.0 }
 0x1d4   :  { %v268_v54 = vrot.slane %v267_v53, 4 }
 0x1d6   :  { %v269_v55 = vadd.f32 %v268_v54, %v267_v53 }
 0x1d8   :  { %v270_v56 = vrot.slane %v269_v55, 2 }
 0x1da   :  { %v271_v57 = vadd.f32 %v270_v56, %v269_v55 }
 0x1dc   :  { %v272_v58 = vrot.slane %v271_v57, 1 }
 0x1de   :  { %v273_v59 = vadd.f32 %v272_v58, %v271_v57 }
 0x1e0   :  { %v274_v60 = vmul.f32 0.125, %v273_v59 }
 0x1e2   :  { %v275_v61 = vsub.f32 %v266_v52, %v274_v60 }
 0x1e4   :  { %v276_v62 = vmul.f32 %v275_v61, %v275_v61 }
 0x1e6   :  { %v277_v63 = vsel %vm143_vm2, %v276_v62, 0.0 }
 0x1e7   :  { %v278_v1 = vrot.slane %v277_v63, 4 }
 0x1e9   :  { %v279_v2 = vadd.f32 %v278_v1, %v277_v63 }
 0x1eb   :  { %v280_v3 = vrot.slane %v279_v2, 2 }
 0x1ed   :  { %v281_v4 = vadd.f32 %v280_v3, %v279_v2 }
 0x1ef   :  { %v282_v5 = vrot.slane %v281_v4, 1 }
 0x1f1   :  { %v283_v6 = vadd.f32 %v282_v5, %v281_v4 }
 0x1f3   :  { %v284_v7 = vmul.f32 0.125, %v283_v6 }
 0x1f5   :  { %v285_v8 = vadd.f32 0.1, %v284_v7 }
 0x1f7   :  { %603 = vrsqrt.f32 %v285_v8 }
 0x204   :  { %v604_v9 = vpop.eup %603 }
 0x205   :  { %v287_v11 = vmul.f32 %v604_v9, %v275_v61 }
 0x207   :  { %v295_v13 = vmul.f32 %v521_v10, %v287_v11 }
 0x209   :  { %v303_v14 = vadd.f32 %v522_v12, %v295_v13 }
 0x20b   :  { %590 = vmatmul.mubr.msk.f32.vlgmr.msra.gmra.mxu1 %vm143_vm2, %v303_v14 }
 0x2cb   :  { %v384_v19 = vpop.f32.mrf.mxu1 }
 0x2cc   :  { %v385_v20 = vadd.f32 %v523_v18, %v384_v19 }
 0x2cd   :  { %v591_v21 = vpop.f32.mrf.mxu1 }
 0x2ce   :  { %v388_v22 = vmax.f32 %v385_v20, 0.0 }
 0x2d0   :  { %v390_v0 = vsel %vm389_vm3, %v388_v22, 0.0 }
 0x2d1   :  { %v391_v23 = vrot.slane %v390_v0, 4 }
 0x2d3   :  { %v392_v24 = vadd.f32 %v391_v23, %v390_v0 }
 0x2d5   :  { %v393_v25 = vrot.slane %v392_v24, 2 }
 0x2d7   :  { %v394_v26 = vadd.f32 %v393_v25, %v392_v24 }
 0x2d9   :  { %v395_v27 = vrot.slane %v394_v26, 1 }
 0x2db   :  { %v396_v28 = vadd.f32 %v395_v27, %v394_v26 }
 0x2dd   :  { %v397_v29 = vmul.f32 0.125, %v396_v28 }
 0x2df   :  { %v398_v30 = vsub.f32 %v388_v22, %v397_v29 }
 0x2e1   :  { %v399_v31 = vmul.f32 %v398_v30, %v398_v30 }
 0x2e3   :  { %v400_v32 = vsel %vm389_vm3, %v399_v31, 0.0 }
 0x2e4   :  { %v401_v33 = vrot.slane %v400_v32, 4 }
 0x2e6   :  { %v402_v34 = vadd.f32 %v401_v33, %v400_v32 }
 0x2e8   :  { %v403_v35 = vrot.slane %v402_v34, 2 }
 0x2ea   :  { %v404_v36 = vadd.f32 %v403_v35, %v402_v34 }
 0x2ec   :  { %v405_v37 = vrot.slane %v404_v36, 1 }
 0x2ee   :  { %v406_v38 = vadd.f32 %v405_v37, %v404_v36 }
 0x2f0   :  { %v407_v39 = vmul.f32 0.125, %v406_v38 }
 0x2f2   :  { %v408_v40 = vadd.f32 0.1, %v407_v39 }
 0x2f4   :  { %605 = vrsqrt.f32 %v408_v40 }
 0x301   :  { %v606_v41 = vpop.eup %605 }
 0x302   :  { %v410_v43 = vmul.f32 %v606_v41, %v398_v30 }
 0x304   :  { %v418_v45 = vmul.f32 %v525_v42, %v410_v43 }
 0x306   :  { %v426_v46 = vadd.f32 %v526_v44, %v418_v45 }
 0x308   :  { %597 = vmatmul.mubr.msk.f32.vlgmr.msra.gmra.mxu0 %vm389_vm3, %v426_v46 }
 0x3c8   :  { %v505_v48 = vpop.f32.mrf.mxu0 }
 0x3c9   :  { %v506_v49 = vadd.f32 %v527_v47, %v505_v48 }
 0x3ca   :  { %v598_v50 = vpop.f32.mrf.mxu0 }
 0x3cb   :  { %510 = vst.msk [vmem:[%s829_s15] sm:$0xff] %vm509_vm4, %v506_v49 }

</bundles_post_ra>
